<compile_context>
chip_gen: v5e
topology: v5e:2x2
jax: 0.10.0
libtpu: 0.0.40
codegen_flags: <defaults>
</compile_context>

<pallas_src>
import jax
import jax.numpy as jnp
from jax.experimental import pallas as pl
from jax.experimental.pallas import tpu as pltpu


_LANES = 128                            # vreg lane width; last dim stays lane-dense
_TARGET_TILE_BYTES = 2 * 1024 * 1024    # ~2 MiB/tile -> ~8 MiB pipelined (2 bufs x in/out)


def _exp_kernel(x_ref, o_ref):
    # Whole-tile elementwise exp: full-lane load, EUP exp, full-lane unmasked store.
    o_ref[...] = jnp.exp(x_ref[...])


def _round_up(a, b):
    return ((a + b - 1) // b) * b


def _sublane_multiple(itemsize):
    # Packed sublane multiple per dtype width: f32 -> 8, bf16/f16 -> 16, int8/fp8 -> 32.
    return {4: 8, 2: 16, 1: 32}.get(itemsize, 8)


def _choose_tile_rows(rows, itemsize):
    sub = _sublane_multiple(itemsize)
    if rows <= sub:
        # Single block equal to the whole (tiny) slab; legal because it matches the array dims.
        return rows
    cap = max(sub, (_TARGET_TILE_BYTES // (_LANES * itemsize)) // sub * sub)
    # At least 2 tiles so v7x's two TensorCores both get work; otherwise as big as the cap.
    tile = _round_up(pl.cdiv(rows, 2), sub)
    return min(cap, tile)


@jax.jit
def pallas_exp(x):
    """Elementwise exp(x) (torch.exp semantics) via a Pallas TPU kernel."""
    # torch.exp returns floating point for integer/bool inputs; f64 is not a TPU dtype.
    if not jnp.issubdtype(x.dtype, jnp.floating):
        x = x.astype(jnp.float32)

    orig_shape = x.shape
    dtype = x.dtype
    n = x.size
    if n == 0:
        return jnp.exp(x)

    itemsize = jnp.dtype(dtype).itemsize

    # Flatten to a lane-dense (rows, 128) slab.  Pad only to the next multiple of 128
    # (at most 127 elements); never pad up to a tile multiple.
    flat = x.reshape(-1)
    pad = (-n) % _LANES
    if pad:
        flat = jnp.pad(flat, (0, pad))  # exp(0)=1 lands only in the sliced-off tail
    rows = (n + pad) // _LANES
    x2d = flat.reshape(rows, _LANES)

    tile_rows = _choose_tile_rows(rows, itemsize)
    grid = (pl.cdiv(rows, tile_rows),)  # ragged last block is fine for elementwise

    out2d = pl.pallas_call(
        _exp_kernel,
        out_shape=jax.ShapeDtypeStruct((rows, _LANES), dtype),
        grid_spec=pltpu.PrefetchScalarGridSpec(
            num_scalar_prefetch=0,
            grid=grid,
            in_specs=[pl.BlockSpec((tile_rows, _LANES), lambda i: (i, 0))],
            out_specs=pl.BlockSpec((tile_rows, _LANES), lambda i: (i, 0)),
        ),
        compiler_params=pltpu.CompilerParams(
            # Row tiles are independent -> shard across both TensorCores on v7x;
            # harmless serial loop on single-TC v5e/v6e.
            dimension_semantics=("parallel",),
            # ~8 MiB of pipelined buffers; 32 MiB headroom is valid on v5e (128 MiB
            # physical), v6e (128 MiB) and v7x (64 MiB physical, 32 MiB default scoped).
            vmem_limit_bytes=32 * 1024 * 1024,
        ),
        cost_estimate=pl.CostEstimate(
            flops=0,
            transcendentals=rows * _LANES,
            bytes_accessed=2 * rows * _LANES * itemsize,
        ),
    )(x2d)

    out = out2d.reshape(-1)
    if pad:
        out = out[:n]
    return out.reshape(orig_shape)


if __name__ == "__main__":
    key = jax.random.PRNGKey(0)
    k1, k2, k3 = jax.random.split(key, 3)

    # Shape implied by the module's "any tensor" contract.
    x = jax.random.normal(k1, (2, 4, 16, 16), dtype=jnp.float32)
    out = jax.block_until_ready(pallas_exp(x))
    assert out.shape == x.shape and out.dtype == x.dtype
    assert jnp.allclose(out, jnp.exp(x), atol=1e-5, rtol=1e-5)

    # Ragged element count (exercises the <=127-element pad + slice path).
    y = jax.random.normal(k2, (3, 5, 7), dtype=jnp.float32)
    out_y = jax.block_until_ready(pallas_exp(y))
    assert out_y.shape == y.shape
    assert jnp.allclose(out_y, jnp.exp(y), atol=1e-5, rtol=1e-5)

    # bf16, multi-tile grid with a ragged last block (rows not a multiple of tile_rows).
    z = jax.random.normal(k3, (5, 100, 128), dtype=jnp.bfloat16)
    out_z = jax.block_until_ready(pallas_exp(z))
    assert out_z.shape == z.shape and out_z.dtype == z.dtype
    assert jnp.allclose(out_z.astype(jnp.float32), jnp.exp(z.astype(jnp.float32)),
                        atol=2e-2, rtol=2e-2)

    # Integer input: torch.exp promotes to float.
    w = jnp.arange(-32, 32, dtype=jnp.int32).reshape(8, 8)
    out_w = jax.block_until_ready(pallas_exp(w))
    assert out_w.dtype == jnp.float32
    assert jnp.allclose(out_w, jnp.exp(w.astype(jnp.float32)), rtol=1e-5)

    print("KERNEL_OK")
</pallas_src>

<mosaic_0001>
module attributes {stable_mosaic.version = 11 : i64} {
  func.func @_exp_kernel(%arg0: i32, %arg1: memref<8x128xf32, #tpu.memory_space<vmem>>, %arg2: memref<8x128xf32, #tpu.memory_space<vmem>>) attributes {dimension_semantics = [#tpu.dimension_semantics<parallel>], iteration_bounds = array<i64: 2>, scalar_prefetch = 0 : i64, scratch_operands = 0 : i64, tpu.core_type = #tpu.core_type<tc>, window_params = [{transform_indices = @transform_0, window_bounds = array<i64: 8, 128>}, {transform_indices = @transform_1, window_bounds = array<i64: 8, 128>}]} {
    %c0 = arith.constant 0 : index
    %c0_0 = arith.constant 0 : index
    %0 = vector.load %arg1[%c0, %c0_0] : memref<8x128xf32, #tpu.memory_space<vmem>>, vector<8x128xf32>
    %1 = math.exp %0 : vector<8x128xf32>
    %c0_1 = arith.constant 0 : index
    %c0_2 = arith.constant 0 : index
    %2 = vector.load %arg2[%c0_1, %c0_2] : memref<8x128xf32, #tpu.memory_space<vmem>>, vector<8x128xf32>
    tpu.vector_store %arg2[%c0_1, %c0_2], %1 {strides = array<i32>} : memref<8x128xf32, #tpu.memory_space<vmem>>, vector<8x128xf32>,
    return
  }
  func.func @transform_0(%arg0: i32) -> (i32, i32) {
    %c0_i32 = arith.constant 0 : i32
    %c0_i32_0 = arith.constant 0 : i32
    return %arg0, %c0_i32 : i32, i32
  }
  func.func @transform_1(%arg0: i32) -> (i32, i32) {
    %c0_i32 = arith.constant 0 : i32
    %c0_i32_0 = arith.constant 0 : i32
    return %arg0, %c0_i32 : i32, i32
  }
}

</mosaic_0001>

<bundles_post_ra>
// kernel: pallas_exp.1
= control target key start
LH: loop header
LB: loop body
LE: loop exit
PB: predicated region body
PF: predicated region fallthrough
CT: control target
= control target key end

     0   :  { %s192_s6 = smov 0   ;;  %s212_s0 = inlined_call_operand.vmem [shape: f32[16,128], index: 0, kind: input, shape index: {}]   ;;  %s213_s1 = inlined_call_operand.vmem [shape: f32[16,128], index: 1, kind: output, shape index: {}]  }
   0x1 LB: > { %s169_s7 = sadd.s32 4294967295, %s194_s6   ;;  %p173_p0 = scmp.ge.s32.totalorder %s194_s6, 1  ;;  %s194_s6 = sphi %s192_s6, %s11_s6  }
   0x2   : > { %p86_p1 = scmp.lt.s32.totalorder %s194_s6, 3 }
   0x4   : > { %p87_p2 = pnand %p173_p0, %p86_p1 }
   0x5   : > { %p104_p3 = scmp.lt.s32.totalorder (!%p87_p2), %s169_s7, 1 }
   0x6   : > { %90 = sbr.rel (%p87_p2) target bundleno = 25 (0x19), region = 24 }
   0xb   : > { %s215_s7 = smov (!%p104_p3, %s169_s7), 1 }
   0xc   : > { %s174_s8 = sshll.u32 %s215_s7, 3 }
   0xd   : > { %s107_s11 = scalar_lea.vmem %s212_s0, %s174_s8  ;;  %s111_s14 = scalar_lea.vmem %s213_s1, %s174_s8 }
   0xe   : > { %v112_v0 = vld [vmem:[%s107_s11] sm:$0xff] }
   0xf   : > { %v113_v1 = vmul.f32 1.442695, %v112_v0 }
  0x11   : > { %186 = vpow2.f32 %v113_v1 }
  0x17   : > { %v187_v2 = vpop.eup %186 }
  0x18   : > { %115 = vst [vmem:[%s111_s14] sm:$0xff] %v187_v2 }
  0x19 PF: > { %s11_s6 = sadd.s32 1, %s194_s6  }
  0x1a   : > { %p8_p4 = scmp.ge.s32.totalorder %s11_s6, 4  }
  0x1c   :  { %10 = sbr.rel (!%p8_p4) target bundleno = 1 (0x1), region = 54 }

</bundles_post_ra>
